<compile_context>
chip_gen: v6e
topology: v6e:2x2x1
jax: 0.10.0
libtpu: 0.0.40
codegen_flags: <defaults>
</compile_context>

<pallas_src>
import functools

import jax
import jax.numpy as jnp
from jax.experimental import pallas as pl
from jax.experimental.pallas import tpu as pltpu


def _round_up(n, m):
    return ((n + m - 1) // m) * m


def bernoulli_linear_kernel(x_ref, w_ref, b_ref, logits_ref, probs_ref):
    """logits = x @ W + b (MXU, f32 acc); probs = sigmoid(logits) (EUP epilogue)."""
    logits = (
        jnp.dot(x_ref[...], w_ref[...], preferred_element_type=jnp.float32)
        + b_ref[...]
    )
    logits_ref[...] = logits.astype(logits_ref.dtype)
    probs_ref[...] = jax.nn.sigmoid(logits).astype(probs_ref.dtype)


@functools.partial(jax.jit, static_argnames=("tm",))
def bernoulli_forward(x, w, b, *, tm=2048):
    """x: (B, Din) f32; w: (Din, Dout) f32; b: (1, Dout) f32.

    Returns (logits, probs), each (B, Dout) f32 — the defining tensors of the
    FixedBernoulli distribution the PyTorch module returns. `mode` is a fused
    downstream compare: (logits > 0).astype(f32).
    """
    B, Din = x.shape
    Dout = w.shape[1]

    # Row tile: multiple of 8 (sublane), large to amortize grid-step overhead.
    tm_rows = min(tm, _round_up(B, 8))
    # Keep the double-buffered working set safely under v5e's 16 MiB scoped default.
    bytes_per_row = 4 * (Din + 2 * Dout)
    while tm_rows > 8 and 2 * tm_rows * bytes_per_row > 12 * 1024 * 1024:
        tm_rows = _round_up(tm_rows // 2, 8)
    # v7x has 2 TensorCores; make sure "parallel" has >= 2 grid steps to shard over
    # for mid/large batches (grid of 1 would idle one core).
    if B >= 2048 and pl.cdiv(B, tm_rows) < 2:
        tm_rows = _round_up(pl.cdiv(B, 2), 8)

    grid = (pl.cdiv(B, tm_rows),)

    cost = pl.CostEstimate(
        flops=2 * B * Din * Dout,
        transcendentals=B * Dout,
        bytes_accessed=4 * (B * Din + Din * Dout + Dout + 2 * B * Dout),
    )

    logits, probs = pl.pallas_call(
        bernoulli_linear_kernel,
        out_shape=(
            jax.ShapeDtypeStruct((B, Dout), jnp.float32),
            jax.ShapeDtypeStruct((B, Dout), jnp.float32),
        ),
        grid_spec=pltpu.PrefetchScalarGridSpec(
            num_scalar_prefetch=0,
            grid=grid,
            in_specs=[
                pl.BlockSpec((tm_rows, Din), lambda i: (i, 0)),   # x tile, pipelined
                pl.BlockSpec((Din, Dout), lambda i: (0, 0)),      # W: VMEM-resident
                pl.BlockSpec((1, Dout), lambda i: (0, 0)),        # bias: VMEM-resident
            ],
            out_specs=[
                pl.BlockSpec((tm_rows, Dout), lambda i: (i, 0)),  # logits
                pl.BlockSpec((tm_rows, Dout), lambda i: (i, 0)),  # probs
            ],
        ),
        compiler_params=pltpu.CompilerParams(
            dimension_semantics=("parallel",),   # batch axis shards across TCs on v7x
        ),
        cost_estimate=cost,
    )(x, w, b)
    return logits, probs


def bernoulli_mode(logits):
    """FixedBernoulli.mode(): (probs > 0.5).float() == (logits > 0).float().

    Left outside the kernel so XLA fuses this single VPU compare into the consumer,
    saving a full output plane of HBM writeback on a write-bound kernel.
    """
    return (logits > 0.0).astype(jnp.float32)


def init_bernoulli_params(key, num_inputs, num_outputs, gain=0.01):
    """Matches init_(nn.Linear): orthogonal weight with gain, zero bias.

    Weight is stored transposed as (Din, Dout) f32, unpadded (memory-bound kernel;
    lane padding would only inflate HBM traffic).
    """
    # torch weight shape: (num_outputs, num_inputs); orthogonal init, scaled by gain.
    w = jax.nn.initializers.orthogonal(scale=gain)(
        key, (num_outputs, num_inputs), jnp.float32
    )
    w_t = jnp.asarray(w.T, jnp.float32)                 # (Din, Dout)
    b = jnp.zeros((1, num_outputs), jnp.float32)        # nn.init.constant_(bias, 0)
    return w_t, b


if __name__ == "__main__":
    key = jax.random.PRNGKey(0)
    k_x, k_w = jax.random.split(key)

    batch, num_inputs, num_outputs = 8, 32, 16
    x = jax.random.normal(k_x, (batch, num_inputs), jnp.float32)
    w_t, b = init_bernoulli_params(k_w, num_inputs, num_outputs, gain=0.01)

    logits, probs = bernoulli_forward(x, w_t, b)
    mode = bernoulli_mode(logits)
    jax.block_until_ready((logits, probs, mode))

    # Reference check in plain JAX.
    ref_logits = x @ w_t + b
    ref_probs = jax.nn.sigmoid(ref_logits)
    ref_mode = (ref_probs > 0.5).astype(jnp.float32)
    assert logits.shape == (batch, num_outputs)
    assert probs.shape == (batch, num_outputs)
    assert jnp.allclose(logits, ref_logits, atol=1e-5)
    assert jnp.allclose(probs, ref_probs, atol=1e-6)
    assert jnp.array_equal(mode, ref_mode)

    # TODO(synk): FixedBernoulli.sample()/log_probs()/entropy() (ACTLayer's stochastic
    # forward path) are left to the consumer; the kernel emits the defining tensors
    # (logits, probs) of the returned distribution, and mode() is a fused downstream op.

    print("KERNEL_OK")
</pallas_src>

<mosaic_0001>
module attributes {stable_mosaic.version = 11 : i64} {
  func.func @bernoulli_linear_kernel(%arg0: i32, %arg1: memref<8x32xf32, #tpu.memory_space<vmem>>, %arg2: memref<32x16xf32, #tpu.memory_space<vmem>>, %arg3: memref<1x16xf32, #tpu.memory_space<vmem>>, %arg4: memref<8x16xf32, #tpu.memory_space<vmem>>, %arg5: memref<8x16xf32, #tpu.memory_space<vmem>>) attributes {dimension_semantics = [#tpu.dimension_semantics<parallel>], iteration_bounds = array<i64: 1>, scalar_prefetch = 0 : i64, scratch_operands = 0 : i64, tpu.core_type = #tpu.core_type<tc>, window_params = [{transform_indices = @transform_0, window_bounds = array<i64: 8, 32>}, {pipeline_mode = #tpu.pipeline_mode<synchronous>, transform_indices = @transform_1, window_bounds = array<i64: 32, 16>}, {pipeline_mode = #tpu.pipeline_mode<synchronous>, transform_indices = @transform_2, window_bounds = array<i64: 1, 16>}, {transform_indices = @transform_3, window_bounds = array<i64: 8, 16>}, {transform_indices = @transform_4, window_bounds = array<i64: 8, 16>}]} {
    %c0 = arith.constant 0 : index
    %c0_0 = arith.constant 0 : index
    %0 = vector.load %arg1[%c0, %c0_0] : memref<8x32xf32, #tpu.memory_space<vmem>>, vector<8x32xf32>
    %c0_1 = arith.constant 0 : index
    %c0_2 = arith.constant 0 : index
    %1 = vector.load %arg2[%c0_1, %c0_2] : memref<32x16xf32, #tpu.memory_space<vmem>>, vector<32x16xf32>
    %cst = arith.constant dense<0.000000e+00> : vector<8x16xf32>
    %2 = tpu.matmul %0, %1, %cst {dimension_numbers = #tpu.dot_dimension_numbers<[1], [0], [0], [1], [0, 0, 1, 1], [], []>} : vector<8x32xf32>, vector<32x16xf32>, vector<8x16xf32> -> vector<8x16xf32>
    %c0_3 = arith.constant 0 : index
    %c0_4 = arith.constant 0 : index
    %3 = vector.load %arg3[%c0_3, %c0_4] : memref<1x16xf32, #tpu.memory_space<vmem>>, vector<1x16xf32>
    %4 = vector.broadcast %3 : vector<1x16xf32> to vector<8x16xf32>
    %5 = arith.addf %2, %4 : vector<8x16xf32>
    %c0_5 = arith.constant 0 : index
    %c0_6 = arith.constant 0 : index
    %6 = vector.load %arg4[%c0_5, %c0_6] : memref<8x16xf32, #tpu.memory_space<vmem>>, vector<8x16xf32>
    tpu.vector_store %arg4[%c0_5, %c0_6], %5 {strides = array<i32>} : memref<8x16xf32, #tpu.memory_space<vmem>>, vector<8x16xf32>,
    %7 = arith.negf %5 : vector<8x16xf32>
    %8 = math.exp %7 : vector<8x16xf32>
    %cst_7 = arith.constant 1.000000e+00 : f32
    %9 = vector.broadcast %cst_7 : f32 to vector<8x16xf32>
    %10 = arith.addf %9, %8 : vector<8x16xf32>
    %11 = arith.divf %9, %10 : vector<8x16xf32>
    %c0_8 = arith.constant 0 : index
    %c0_9 = arith.constant 0 : index
    %12 = vector.load %arg5[%c0_8, %c0_9] : memref<8x16xf32, #tpu.memory_space<vmem>>, vector<8x16xf32>
    tpu.vector_store %arg5[%c0_8, %c0_9], %11 {strides = array<i32>} : memref<8x16xf32, #tpu.memory_space<vmem>>, vector<8x16xf32>,
    return
  }
  func.func @transform_0(%arg0: i32) -> (i32, i32) {
    %c0_i32 = arith.constant 0 : i32
    %c0_i32_0 = arith.constant 0 : i32
    return %arg0, %c0_i32 : i32, i32
  }
  func.func @transform_1(%arg0: i32) -> (i32, i32) {
    %c0_i32 = arith.constant 0 : i32
    %c0_i32_0 = arith.constant 0 : i32
    %c0_i32_1 = arith.constant 0 : i32
    return %c0_i32, %c0_i32_0 : i32, i32
  }
  func.func @transform_2(%arg0: i32) -> (i32, i32) {
    %c0_i32 = arith.constant 0 : i32
    %c0_i32_0 = arith.constant 0 : i32
    %c0_i32_1 = arith.constant 0 : i32
    return %c0_i32, %c0_i32_0 : i32, i32
  }
  func.func @transform_3(%arg0: i32) -> (i32, i32) {
    %c0_i32 = arith.constant 0 : i32
    %c0_i32_0 = arith.constant 0 : i32
    return %arg0, %c0_i32 : i32, i32
  }
  func.func @transform_4(%arg0: i32) -> (i32, i32) {
    %c0_i32 = arith.constant 0 : i32
    %c0_i32_0 = arith.constant 0 : i32
    return %arg0, %c0_i32 : i32, i32
  }
}

</mosaic_0001>

<bundles_post_ra>
// kernel: bernoulli_forward.1
= control target key start
LH: loop header
LB: loop body
LE: loop exit
PB: predicated region body
PF: predicated region fallthrough
CT: control target
= control target key end

     0   :  { %10 = vsyncpa [#allocation3], 0  ;;  %v212_v1 = vmov 0.0   ;;  %vm213_vm0 = vmmov 0   ;;  %s267_s0 = inlined_call_operand.vmem [shape: f32[8,32], index: 0, kind: input, shape index: {}]   ;;  %s268_s1 = inlined_call_operand.vmem [shape: f32[32,16], index: 1, kind: input, shape index: {}]   ;;  %s269_s2 = inlined_call_operand.vmem [shape: f32[1,16], index: 2, kind: input, shape index: {}]   ;;  %s270_s3 = inlined_call_operand.hbm [shape: f32[8,16], index: 3, kind: output, shape index: {0}]   ;;  %s271_s4 = inlined_call_operand.hbm [shape: f32[8,16], index: 4, kind: output, shape index: {1}]  }
   0x1   :  { %v22_v0 = vld [vmem:[%s268_s1 + $0x18] sm:$0xff]  ;;  %149 = vmatprep.subr.mxu0 %v212_v1  ;;  %v21_v2 = vld [vmem:[%s268_s1 + $0x10] sm:$0xff]  ;;  %157 = vmatprep.mubr.msk.f32.mxu0 %vm213_vm0, %v212_v1 }
   0x2   :  { %150 = vmatpush3.msra.mxu0 %v22_v0 }
   0x3   :  { %11 = vsyncpa [#allocation5], 0  ;;  %151 = vmatprep.subr.mxu0 %v212_v1  ;;  %v20_v3 = vld [vmem:[%s268_s1 + $0x8] sm:$0xff]  ;;  %v19_v4 = vld [vmem:[%s268_s1] sm:$0xff]  ;;  %vm30_vm1 = vcmask 261120   ;;  %s214_s27 = smov [#allocation2]  }
   0x4   :  { %152 = vmatpush3.msra.mxu0 %v21_v2  ;;  %v18_v5 = vld [vmem:[%s267_s0] sm:$0xff]  ;;  %s119_s28 = sshll.u32 %s214_s27, 4  ;;  %vm104_vm2 = vcmask 130048   ;;  %s120_s28 = int_to_ptr.vmem [resolvable:$true] %s119_s28 }
   0x5   :  { %153 = vmatprep.subr.mxu0 %v212_v1  ;;  %v141_v6 = vld [vmem:[%s269_s2] ss:$0 sm:$0xff]  ;;  %s168_s1 = scalar_lea.vmem %s120_s28, 128  ;;  %p173_p1 = scmp.lt.s32.totalorder %s120_s28, %s120_s28 }
   0x6   :  { %154 = vmatpush3.msra.mxu0 %v20_v3  ;;  %p169_p0 = scmp.ne.s32.totalorder %s120_s28, %s168_s1  ;;  %p174_p2 = scmp.lt.s32.totalorder %s168_s1, %s168_s1 }
   0x7   :  { %155 = vmatprep.subr.mxu0 %v212_v1 }
   0x8   :  { %156 = vmatpush3.msra.mxu0 %v19_v4  ;;  %p175_p3 = por %p174_p2, %p173_p1 }
   0x9   :  { %158 = vmatmul.mubr.msk.f32.vlgmr.msra.gmra.mxu0 %vm30_vm1, %v18_v5 }
   0xa   :  { %p176_p4 = pnand %p175_p3, %p169_p0 }
  0xc9   :  { %v100_v7 = vpop.f32.mrf.mxu0 }
  0xca   :  { %v101_v8 = vadd.f32 %v141_v6, %v100_v7 }
  0xcb   :  { %v159_v9 = vpop.f32.mrf.mxu0 }
  0xcc   :  { %v143_v10 = vmul.f32 -1.442695, %v101_v8  ;;  %105 = vst.msk [vmem:[#allocation2] sm:$0xff] %vm104_vm2, %v101_v8 }
  0xcd   :  { %179 = shalt.err (!%p176_p4)
}
  0xce   :  { %122 = dma.vmem_to_hbm [thread:$0]  %s120_s28, 128, %s270_s3, [#allocation3]   ;;  %164 = vpow2.f32 %v143_v10 }
  0xcf   :  { %s215_s2 = smov [#allocation4]  }
  0xd0   :  { %s129_s30 = sshll.u32 %s215_s2, 4  ;;  %s130_s30 = int_to_ptr.vmem [resolvable:$true] %s129_s30 }
  0xd1   :  { %s188_s5 = scalar_lea.vmem %s130_s30, 128  ;;  %p193_p6 = scmp.lt.s32.totalorder %s130_s30, %s130_s30 }
  0xd2   :  { %p189_p5 = scmp.ne.s32.totalorder %s130_s30, %s188_s5  ;;  %p194_p7 = scmp.lt.s32.totalorder %s188_s5, %s188_s5 }
  0xd4   :  { %p195_p8 = por %p194_p7, %p193_p6 }
  0xd6   :  { %p196_p9 = pnand %p195_p8, %p189_p5 }
  0xdb   :  { %v165_v11 = vpop.eup %164 }
  0xdc   :  { %v109_v12 = vadd.f32 1.0, %v165_v11 }
  0xde   :  { %166 = vrcp.f32 %v109_v12 }
  0xeb   :  { %v167_v13 = vpop.eup %166 }
  0xec   :  { %112 = vst.msk [vmem:[#allocation4] sm:$0xff] %vm104_vm2, %v167_v13 }
  0xed   :  { %199 = shalt.err (!%p196_p9)
}
  0xee   :  { %132 = dma.vmem_to_hbm [thread:$0]  %s130_s30, 128, %s271_s4, [#allocation5]  }
  0xef   :  { %208 = dma.done.wait [#allocation3], 128  }
  0xf0   :  { %209 = vsyncadd [#allocation3], 4294967168 }
  0xf1   :  { %210 = dma.done.wait [#allocation5], 128  }
  0xf2   :  { %211 = vsyncadd [#allocation5], 4294967168 }
  0xf3   :  { %139 = vsyncpa [#allocation3], 1 }
  0xf4   :  { %140 = vsyncpa [#allocation5], 1 }

</bundles_post_ra>
